<compile_context>
chip_gen: v6e
topology: v6e:2x2x1
jax: 0.10.0
libtpu: 0.0.40
codegen_flags: <defaults>
</compile_context>

<pallas_src>
import jax
import jax.numpy as jnp
from jax.experimental import pallas as pl
from jax.experimental.pallas import tpu as pltpu


# ------------------------------- kernel ------------------------------------ #

def _make_blend_kernel(c_in):
    """sim = sigmoid(x^T M y_up + vx.x + vy.y_up + k0); out = x + sim*(y_up-x).

    Blocks are (1, C, rows, W): W on lanes (dense), rows on sublanes.  The tiny
    channel contraction is fully unrolled as VPU scalar*vector MACs (no MXU),
    with the trace-time-folded coefficients read from SMEM:
      p[c*C + c2] = M[c, c2], p[C*C + c] = vx[c], p[C*C + C + c] = vy[c],
      p[C*C + 2*C] = k0.
    """
    cc = c_in * c_in
    i_vx, i_vy, i_k0 = cc, cc + c_in, cc + 2 * c_in

    def kernel(p_ref, x_ref, yu_ref, o_ref):
        def xs(ci):
            return x_ref[0, ci]          # (rows, W) f32, lane-dense

        def ys(ci):
            return yu_ref[0, ci]         # (rows, W) f32, lane-dense

        # logit = k0 + sum_c vy[c]*yu[c] + sum_c x[c]*(vx[c] + sum_c2 M[c,c2]*yu[c2])
        logit = ys(0) * p_ref[i_vy] + p_ref[i_k0]
        for ci in range(1, c_in):
            logit = logit + ys(ci) * p_ref[i_vy + ci]
        for ci in range(c_in):
            t = ys(0) * p_ref[ci * c_in] + p_ref[i_vx + ci]
            for cj in range(1, c_in):
                t = t + ys(cj) * p_ref[ci * c_in + cj]
            logit = logit + xs(ci) * t

        sim = jax.nn.sigmoid(logit)      # (rows, W)

        # out = (1 - sim) * x + sim * y_up  ==  x + sim * (y_up - x)
        for ci in range(c_in):
            xc = xs(ci)
            o_ref[0, ci] = xc + sim * (ys(ci) - xc)

    return kernel


# ------------------------------ tiling ------------------------------------- #

def _row_tile(c, h, w, target_bytes=512 * 1024):
    """Image rows per block: ~target_bytes per f32 input slab, multiple of 8
    (or the full H when H is small)."""
    rows = (target_bytes // (4 * c * w)) // 8 * 8
    rows = max(8, rows)
    return h if h <= rows else rows


# ----------------------------- Pag forward --------------------------------- #

def pag_forward(x, y, params, *, after_relu=False, with_channel=False):
    """x, y: float32 NCHW.  Returns an NCHW tensor with x's shape (Pag.forward)."""
    if with_channel:
        # TODO(synk): with_channel=True branch (extra 1x1 up-conv + BN +
        # per-channel sigmoid) not implemented; default config uses False.
        raise NotImplementedError("with_channel=True not implemented")

    n, c, h, w = x.shape
    ny, cy, hy, wy = y.shape
    assert ny == n and cy == c, "x and y must share batch and channel dims"

    if after_relu:
        x = jnp.maximum(x, 0.0)
        y = jnp.maximum(y, 0.0)

    # Bilinear upsample of y to x's spatial size (align_corners=False).
    # TODO(synk): fuse the 4-tap interpolation into the kernel via
    # scalar-prefetched neighbor indices/weights to drop this HBM round trip.
    y_up = jax.image.resize(y, (n, c, h, w), method="bilinear")

    # Trace-time fold: BN scale into weights, then both 1x1 convs + biases and
    # the mid-channel reduction into a CxC bilinear form (see module header).
    wx_s = params["wx"] * params["scale_x"][None, :]       # (C, M)
    wy_s = params["wy"] * params["scale_y"][None, :]       # (C, M)
    bx, by = params["bias_x"], params["bias_y"]            # (M,)
    m_mat = wx_s @ wy_s.T                                   # (C, C)
    vx = wx_s @ by                                          # (C,)
    vy = wy_s @ bx                                          # (C,)
    k0 = jnp.dot(bx, by)                                    # ()
    p = jnp.concatenate([m_mat.reshape(-1), vx, vy, k0[None]]).astype(jnp.float32)

    rt = _row_tile(c, h, w)
    grid = (n, pl.cdiv(h, rt))
    blk = (1, c, rt, w)
    tile_map = lambda b, r: (b, 0, r, 0)

    return pl.pallas_call(
        _make_blend_kernel(c),
        out_shape=jax.ShapeDtypeStruct((n, c, h, w), jnp.float32),
        grid_spec=pltpu.PrefetchScalarGridSpec(
            num_scalar_prefetch=0,
            grid=grid,
            in_specs=[
                pl.BlockSpec(memory_space=pltpu.MemorySpace.SMEM),  # folded params
                pl.BlockSpec(blk, tile_map),                        # x
                pl.BlockSpec(blk, tile_map),                        # y_up
            ],
            out_specs=pl.BlockSpec(blk, tile_map),
        ),
        compiler_params=pltpu.CompilerParams(
            dimension_semantics=("parallel", "parallel")),
    )(p, x, y_up)


# ------------------------------- params ------------------------------------ #

def make_pag_params(key, in_channels, mid_channels, eps=1e-5):
    """Deterministic synthetic params.  BN is eval-mode, expressed as a
    per-channel (scale, bias) applied after the 1x1 conv."""
    ks = jax.random.split(key, 6)
    wx = jax.random.normal(ks[0], (in_channels, mid_channels), jnp.float32) * 0.1
    wy = jax.random.normal(ks[1], (in_channels, mid_channels), jnp.float32) * 0.1

    def bn_fold(kg, kb):
        gamma = 1.0 + 0.1 * jax.random.normal(kg, (mid_channels,), jnp.float32)
        beta = 0.1 * jax.random.normal(kb, (mid_channels,), jnp.float32)
        running_mean = jnp.zeros((mid_channels,), jnp.float32)
        running_var = jnp.ones((mid_channels,), jnp.float32)
        scale = gamma / jnp.sqrt(running_var + eps)
        bias = beta - running_mean * scale
        return scale, bias

    scale_x, bias_x = bn_fold(ks[2], ks[3])
    scale_y, bias_y = bn_fold(ks[4], ks[5])
    return dict(wx=wx, wy=wy, scale_x=scale_x, bias_x=bias_x,
                scale_y=scale_y, bias_y=bias_y)


# ----------------------------- reference ----------------------------------- #

def pag_reference(x, y, params):
    """Pure-JAX reference mirroring the PyTorch module structure."""
    n, c, h, w = x.shape
    sx = params["scale_x"].reshape(1, -1, 1, 1)
    bx = params["bias_x"].reshape(1, -1, 1, 1)
    sy = params["scale_y"].reshape(1, -1, 1, 1)
    by = params["bias_y"].reshape(1, -1, 1, 1)
    y_q = jnp.einsum("nchw,cm->nmhw", y, params["wy"]) * sy + by
    y_q = jax.image.resize(y_q, (n, y_q.shape[1], h, w), method="bilinear")
    x_k = jnp.einsum("nchw,cm->nmhw", x, params["wx"]) * sx + bx
    sim = jax.nn.sigmoid(jnp.sum(x_k * y_q, axis=1, keepdims=True))
    y_up = jax.image.resize(y, (n, c, h, w), method="bilinear")
    return (1.0 - sim) * x + sim * y_up


# -------------------------------- main ------------------------------------- #

if __name__ == "__main__":
    key = jax.random.PRNGKey(0)
    k_x, k_y, k_p = jax.random.split(key, 3)

    in_channels, mid_channels = 4, 32
    N, H, W = 2, 16, 16          # x: high-res branch
    Hy, Wy = 8, 8                # y: low-res branch (bilinearly upsampled)

    x = jax.random.normal(k_x, (N, in_channels, H, W), jnp.float32)
    y = jax.random.normal(k_y, (N, in_channels, Hy, Wy), jnp.float32)
    params = make_pag_params(k_p, in_channels, mid_channels)

    fwd = jax.jit(pag_forward)
    out = jax.block_until_ready(fwd(x, y, params))
    ref = jax.block_until_ready(pag_reference(x, y, params))

    assert out.shape == x.shape and out.dtype == jnp.float32
    max_err = float(jnp.max(jnp.abs(out - ref)))
    assert jnp.allclose(out, ref, atol=5e-5, rtol=1e-5), f"max abs err {max_err}"

    print("KERNEL_OK")
</pallas_src>

<mosaic_0001>
module attributes {stable_mosaic.version = 11 : i64} {
  func.func @kernel(%arg0: i32, %arg1: i32, %arg2: memref<25xf32, #tpu.memory_space<smem>>, %arg3: memref<1x4x16x16xf32, #tpu.memory_space<vmem>>, %arg4: memref<1x4x16x16xf32, #tpu.memory_space<vmem>>, %arg5: memref<1x4x16x16xf32, #tpu.memory_space<vmem>>) attributes {dimension_semantics = [#tpu.dimension_semantics<parallel>, #tpu.dimension_semantics<parallel>], iteration_bounds = array<i64: 2, 1>, scalar_prefetch = 0 : i64, scratch_operands = 0 : i64, tpu.core_type = #tpu.core_type<tc>, window_params = [{transform_indices = @transform_0, window_bounds = array<i64: 25>}, {transform_indices = @transform_1, window_bounds = array<i64: 1, 4, 16, 16>}, {transform_indices = @transform_2, window_bounds = array<i64: 1, 4, 16, 16>}, {transform_indices = @transform_3, window_bounds = array<i64: 1, 4, 16, 16>}]} {
    %c0 = arith.constant 0 : index
    %c0_0 = arith.constant 0 : index
    %c0_1 = arith.constant 0 : index
    %c0_2 = arith.constant 0 : index
    %0 = vector.load %arg4[%c0, %c0_0, %c0_1, %c0_2] : memref<1x4x16x16xf32, #tpu.memory_space<vmem>>, vector<1x1x16x16xf32>
    %1 = vector.shape_cast %0 : vector<1x1x16x16xf32> to vector<16x16xf32>
    %c20 = arith.constant 20 : index
    %2 = memref.load %arg2[%c20] : memref<25xf32, #tpu.memory_space<smem>>
    %3 = vector.broadcast %2 : f32 to vector<16x16xf32>
    %4 = arith.mulf %1, %3 : vector<16x16xf32>
    %c24 = arith.constant 24 : index
    %5 = memref.load %arg2[%c24] : memref<25xf32, #tpu.memory_space<smem>>
    %6 = vector.broadcast %5 : f32 to vector<16x16xf32>
    %7 = arith.addf %4, %6 : vector<16x16xf32>
    %c0_3 = arith.constant 0 : index
    %c1 = arith.constant 1 : index
    %c0_4 = arith.constant 0 : index
    %c0_5 = arith.constant 0 : index
    %8 = vector.load %arg4[%c0_3, %c1, %c0_4, %c0_5] : memref<1x4x16x16xf32, #tpu.memory_space<vmem>>, vector<1x1x16x16xf32>
    %9 = vector.shape_cast %8 : vector<1x1x16x16xf32> to vector<16x16xf32>
    %c21 = arith.constant 21 : index
    %10 = memref.load %arg2[%c21] : memref<25xf32, #tpu.memory_space<smem>>
    %11 = vector.broadcast %10 : f32 to vector<16x16xf32>
    %12 = arith.mulf %9, %11 : vector<16x16xf32>
    %13 = arith.addf %7, %12 : vector<16x16xf32>
    %c0_6 = arith.constant 0 : index
    %c2 = arith.constant 2 : index
    %c0_7 = arith.constant 0 : index
    %c0_8 = arith.constant 0 : index
    %14 = vector.load %arg4[%c0_6, %c2, %c0_7, %c0_8] : memref<1x4x16x16xf32, #tpu.memory_space<vmem>>, vector<1x1x16x16xf32>
    %15 = vector.shape_cast %14 : vector<1x1x16x16xf32> to vector<16x16xf32>
    %c22 = arith.constant 22 : index
    %16 = memref.load %arg2[%c22] : memref<25xf32, #tpu.memory_space<smem>>
    %17 = vector.broadcast %16 : f32 to vector<16x16xf32>
    %18 = arith.mulf %15, %17 : vector<16x16xf32>
    %19 = arith.addf %13, %18 : vector<16x16xf32>
    %c0_9 = arith.constant 0 : index
    %c3 = arith.constant 3 : index
    %c0_10 = arith.constant 0 : index
    %c0_11 = arith.constant 0 : index
    %20 = vector.load %arg4[%c0_9, %c3, %c0_10, %c0_11] : memref<1x4x16x16xf32, #tpu.memory_space<vmem>>, vector<1x1x16x16xf32>
    %21 = vector.shape_cast %20 : vector<1x1x16x16xf32> to vector<16x16xf32>
    %c23 = arith.constant 23 : index
    %22 = memref.load %arg2[%c23] : memref<25xf32, #tpu.memory_space<smem>>
    %23 = vector.broadcast %22 : f32 to vector<16x16xf32>
    %24 = arith.mulf %21, %23 : vector<16x16xf32>
    %25 = arith.addf %19, %24 : vector<16x16xf32>
    %c0_12 = arith.constant 0 : index
    %c0_13 = arith.constant 0 : index
    %c0_14 = arith.constant 0 : index
    %c0_15 = arith.constant 0 : index
    %26 = vector.load %arg4[%c0_12, %c0_13, %c0_14, %c0_15] : memref<1x4x16x16xf32, #tpu.memory_space<vmem>>, vector<1x1x16x16xf32>
    %27 = vector.shape_cast %26 : vector<1x1x16x16xf32> to vector<16x16xf32>
    %c0_16 = arith.constant 0 : index
    %28 = memref.load %arg2[%c0_16] : memref<25xf32, #tpu.memory_space<smem>>
    %29 = vector.broadcast %28 : f32 to vector<16x16xf32>
    %30 = arith.mulf %27, %29 : vector<16x16xf32>
    %c16 = arith.constant 16 : index
    %31 = memref.load %arg2[%c16] : memref<25xf32, #tpu.memory_space<smem>>
    %32 = vector.broadcast %31 : f32 to vector<16x16xf32>
    %33 = arith.addf %30, %32 : vector<16x16xf32>
    %c0_17 = arith.constant 0 : index
    %c1_18 = arith.constant 1 : index
    %c0_19 = arith.constant 0 : index
    %c0_20 = arith.constant 0 : index
    %34 = vector.load %arg4[%c0_17, %c1_18, %c0_19, %c0_20] : memref<1x4x16x16xf32, #tpu.memory_space<vmem>>, vector<1x1x16x16xf32>
    %35 = vector.shape_cast %34 : vector<1x1x16x16xf32> to vector<16x16xf32>
    %c1_21 = arith.constant 1 : index
    %36 = memref.load %arg2[%c1_21] : memref<25xf32, #tpu.memory_space<smem>>
    %37 = vector.broadcast %36 : f32 to vector<16x16xf32>
    %38 = arith.mulf %35, %37 : vector<16x16xf32>
    %39 = arith.addf %33, %38 : vector<16x16xf32>
    %c0_22 = arith.constant 0 : index
    %c2_23 = arith.constant 2 : index
    %c0_24 = arith.constant 0 : index
    %c0_25 = arith.constant 0 : index
    %40 = vector.load %arg4[%c0_22, %c2_23, %c0_24, %c0_25] : memref<1x4x16x16xf32, #tpu.memory_space<vmem>>, vector<1x1x16x16xf32>
    %41 = vector.shape_cast %40 : vector<1x1x16x16xf32> to vector<16x16xf32>
    %c2_26 = arith.constant 2 : index
    %42 = memref.load %arg2[%c2_26] : memref<25xf32, #tpu.memory_space<smem>>
    %43 = vector.broadcast %42 : f32 to vector<16x16xf32>
    %44 = arith.mulf %41, %43 : vector<16x16xf32>
    %45 = arith.addf %39, %44 : vector<16x16xf32>
    %c0_27 = arith.constant 0 : index
    %c3_28 = arith.constant 3 : index
    %c0_29 = arith.constant 0 : index
    %c0_30 = arith.constant 0 : index
    %46 = vector.load %arg4[%c0_27, %c3_28, %c0_29, %c0_30] : memref<1x4x16x16xf32, #tpu.memory_space<vmem>>, vector<1x1x16x16xf32>
    %47 = vector.shape_cast %46 : vector<1x1x16x16xf32> to vector<16x16xf32>
    %c3_31 = arith.constant 3 : index
    %48 = memref.load %arg2[%c3_31] : memref<25xf32, #tpu.memory_space<smem>>
    %49 = vector.broadcast %48 : f32 to vector<16x16xf32>
    %50 = arith.mulf %47, %49 : vector<16x16xf32>
    %51 = arith.addf %45, %50 : vector<16x16xf32>
    %c0_32 = arith.constant 0 : index
    %c0_33 = arith.constant 0 : index
    %c0_34 = arith.constant 0 : index
    %c0_35 = arith.constant 0 : index
    %52 = vector.load %arg3[%c0_32, %c0_33, %c0_34, %c0_35] : memref<1x4x16x16xf32, #tpu.memory_space<vmem>>, vector<1x1x16x16xf32>
    %53 = vector.shape_cast %52 : vector<1x1x16x16xf32> to vector<16x16xf32>
    %54 = arith.mulf %53, %51 : vector<16x16xf32>
    %55 = arith.addf %25, %54 : vector<16x16xf32>
    %c0_36 = arith.constant 0 : index
    %c0_37 = arith.constant 0 : index
    %c0_38 = arith.constant 0 : index
    %c0_39 = arith.constant 0 : index
    %56 = vector.load %arg4[%c0_36, %c0_37, %c0_38, %c0_39] : memref<1x4x16x16xf32, #tpu.memory_space<vmem>>, vector<1x1x16x16xf32>
    %57 = vector.shape_cast %56 : vector<1x1x16x16xf32> to vector<16x16xf32>
    %c4 = arith.constant 4 : index
    %58 = memref.load %arg2[%c4] : memref<25xf32, #tpu.memory_space<smem>>
    %59 = vector.broadcast %58 : f32 to vector<16x16xf32>
    %60 = arith.mulf %57, %59 : vector<16x16xf32>
    %c17 = arith.constant 17 : index
    %61 = memref.load %arg2[%c17] : memref<25xf32, #tpu.memory_space<smem>>
    %62 = vector.broadcast %61 : f32 to vector<16x16xf32>
    %63 = arith.addf %60, %62 : vector<16x16xf32>
    %c0_40 = arith.constant 0 : index
    %c1_41 = arith.constant 1 : index
    %c0_42 = arith.constant 0 : index
    %c0_43 = arith.constant 0 : index
    %64 = vector.load %arg4[%c0_40, %c1_41, %c0_42, %c0_43] : memref<1x4x16x16xf32, #tpu.memory_space<vmem>>, vector<1x1x16x16xf32>
    %65 = vector.shape_cast %64 : vector<1x1x16x16xf32> to vector<16x16xf32>
    %c5 = arith.constant 5 : index
    %66 = memref.load %arg2[%c5] : memref<25xf32, #tpu.memory_space<smem>>
    %67 = vector.broadcast %66 : f32 to vector<16x16xf32>
    %68 = arith.mulf %65, %67 : vector<16x16xf32>
    %69 = arith.addf %63, %68 : vector<16x16xf32>
    %c0_44 = arith.constant 0 : index
    %c2_45 = arith.constant 2 : index
    %c0_46 = arith.constant 0 : index
    %c0_47 = arith.constant 0 : index
    %70 = vector.load %arg4[%c0_44, %c2_45, %c0_46, %c0_47] : memref<1x4x16x16xf32, #tpu.memory_space<vmem>>, vector<1x1x16x16xf32>
    %71 = vector.shape_cast %70 : vector<1x1x16x16xf32> to vector<16x16xf32>
    %c6 = arith.constant 6 : index
    %72 = memref.load %arg2[%c6] : memref<25xf32, #tpu.memory_space<smem>>
    %73 = vector.broadcast %72 : f32 to vector<16x16xf32>
    %74 = arith.mulf %71, %73 : vector<16x16xf32>
    %75 = arith.addf %69, %74 : vector<16x16xf32>
    %c0_48 = arith.constant 0 : index
    %c3_49 = arith.constant 3 : index
    %c0_50 = arith.constant 0 : index
    %c0_51 = arith.constant 0 : index
    %76 = vector.load %arg4[%c0_48, %c3_49, %c0_50, %c0_51] : memref<1x4x16x16xf32, #tpu.memory_space<vmem>>, vector<1x1x16x16xf32>
    %77 = vector.shape_cast %76 : vector<1x1x16x16xf32> to vector<16x16xf32>
    %c7 = arith.constant 7 : index
    %78 = memref.load %arg2[%c7] : memref<25xf32, #tpu.memory_space<smem>>
    %79 = vector.broadcast %78 : f32 to vector<16x16xf32>
    %80 = arith.mulf %77, %79 : vector<16x16xf32>
    %81 = arith.addf %75, %80 : vector<16x16xf32>
    %c0_52 = arith.constant 0 : index
    %c1_53 = arith.constant 1 : index
    %c0_54 = arith.constant 0 : index
    %c0_55 = arith.constant 0 : index
    %82 = vector.load %arg3[%c0_52, %c1_53, %c0_54, %c0_55] : memref<1x4x16x16xf32, #tpu.memory_space<vmem>>, vector<1x1x16x16xf32>
    %83 = vector.shape_cast %82 : vector<1x1x16x16xf32> to vector<16x16xf32>
    %84 = arith.mulf %83, %81 : vector<16x16xf32>
    %85 = arith.addf %55, %84 : vector<16x16xf32>
    %c0_56 = arith.constant 0 : index
    %c0_57 = arith.constant 0 : index
    %c0_58 = arith.constant 0 : index
    %c0_59 = arith.constant 0 : index
    %86 = vector.load %arg4[%c0_56, %c0_57, %c0_58, %c0_59] : memref<1x4x16x16xf32, #tpu.memory_space<vmem>>, vector<1x1x16x16xf32>
    %87 = vector.shape_cast %86 : vector<1x1x16x16xf32> to vector<16x16xf32>
    %c8 = arith.constant 8 : index
    %88 = memref.load %arg2[%c8] : memref<25xf32, #tpu.memory_space<smem>>
    %89 = vector.broadcast %88 : f32 to vector<16x16xf32>
    %90 = arith.mulf %87, %89 : vector<16x16xf32>
    %c18 = arith.constant 18 : index
    %91 = memref.load %arg2[%c18] : memref<25xf32, #tpu.memory_space<smem>>
    %92 = vector.broadcast %91 : f32 to vector<16x16xf32>
    %93 = arith.addf %90, %92 : vector<16x16xf32>
    %c0_60 = arith.constant 0 : index
    %c1_61 = arith.constant 1 : index
    %c0_62 = arith.constant 0 : index
    %c0_63 = arith.constant 0 : index
    %94 = vector.load %arg4[%c0_60, %c1_61, %c0_62, %c0_63] : memref<1x4x16x16xf32, #tpu.memory_space<vmem>>, vector<1x1x16x16xf32>
    %95 = vector.shape_cast %94 : vector<1x1x16x16xf32> to vector<16x16xf32>
    %c9 = arith.constant 9 : index
    %96 = memref.load %arg2[%c9] : memref<25xf32, #tpu.memory_space<smem>>
    %97 = vector.broadcast %96 : f32 to vector<16x16xf32>
    %98 = arith.mulf %95, %97 : vector<16x16xf32>
    %99 = arith.addf %93, %98 : vector<16x16xf32>
    %c0_64 = arith.constant 0 : index
    %c2_65 = arith.constant 2 : index
    %c0_66 = arith.constant 0 : index
    %c0_67 = arith.constant 0 : index
    %100 = vector.load %arg4[%c0_64, %c2_65, %c0_66, %c0_67] : memref<1x4x16x16xf32, #tpu.memory_space<vmem>>, vector<1x1x16x16xf32>
    %101 = vector.shape_cast %100 : vector<1x1x16x16xf32> to vector<16x16xf32>
    %c10 = arith.constant 10 : index
    %102 = memref.load %arg2[%c10] : memref<25xf32, #tpu.memory_space<smem>>
    %103 = vector.broadcast %102 : f32 to vector<16x16xf32>
    %104 = arith.mulf %101, %103 : vector<16x16xf32>
    %105 = arith.addf %99, %104 : vector<16x16xf32>
    %c0_68 = arith.constant 0 : index
    %c3_69 = arith.constant 3 : index
    %c0_70 = arith.constant 0 : index
    %c0_71 = arith.constant 0 : index
    %106 = vector.load %arg4[%c0_68, %c3_69, %c0_70, %c0_71] : memref<1x4x16x16xf32, #tpu.memory_space<vmem>>, vector<1x1x16x16xf32>
    %107 = vector.shape_cast %106 : vector<1x1x16x16xf32> to vector<16x16xf32>
    %c11 = arith.constant 11 : index
    %108 = memref.load %arg2[%c11] : memref<25xf32, #tpu.memory_space<smem>>
    %109 = vector.broadcast %108 : f32 to vector<16x16xf32>
    %110 = arith.mulf %107, %109 : vector<16x16xf32>
    %111 = arith.addf %105, %110 : vector<16x16xf32>
    %c0_72 = arith.constant 0 : index
    %c2_73 = arith.constant 2 : index
    %c0_74 = arith.constant 0 : index
    %c0_75 = arith.constant 0 : index
    %112 = vector.load %arg3[%c0_72, %c2_73, %c0_74, %c0_75] : memref<1x4x16x16xf32, #tpu.memory_space<vmem>>, vector<1x1x16x16xf32>
    %113 = vector.shape_cast %112 : vector<1x1x16x16xf32> to vector<16x16xf32>
    %114 = arith.mulf %113, %111 : vector<16x16xf32>
    %115 = arith.addf %85, %114 : vector<16x16xf32>
    %c0_76 = arith.constant 0 : index
    %c0_77 = arith.constant 0 : index
    %c0_78 = arith.constant 0 : index
    %c0_79 = arith.constant 0 : index
    %116 = vector.load %arg4[%c0_76, %c0_77, %c0_78, %c0_79] : memref<1x4x16x16xf32, #tpu.memory_space<vmem>>, vector<1x1x16x16xf32>
    %117 = vector.shape_cast %116 : vector<1x1x16x16xf32> to vector<16x16xf32>
    %c12 = arith.constant 12 : index
    %118 = memref.load %arg2[%c12] : memref<25xf32, #tpu.memory_space<smem>>
    %119 = vector.broadcast %118 : f32 to vector<16x16xf32>
    %120 = arith.mulf %117, %119 : vector<16x16xf32>
    %c19 = arith.constant 19 : index
    %121 = memref.load %arg2[%c19] : memref<25xf32, #tpu.memory_space<smem>>
    %122 = vector.broadcast %121 : f32 to vector<16x16xf32>
    %123 = arith.addf %120, %122 : vector<16x16xf32>
    %c0_80 = arith.constant 0 : index
    %c1_81 = arith.constant 1 : index
    %c0_82 = arith.constant 0 : index
    %c0_83 = arith.constant 0 : index
    %124 = vector.load %arg4[%c0_80, %c1_81, %c0_82, %c0_83] : memref<1x4x16x16xf32, #tpu.memory_space<vmem>>, vector<1x1x16x16xf32>
    %125 = vector.shape_cast %124 : vector<1x1x16x16xf32> to vector<16x16xf32>
    %c13 = arith.constant 13 : index
    %126 = memref.load %arg2[%c13] : memref<25xf32, #tpu.memory_space<smem>>
    %127 = vector.broadcast %126 : f32 to vector<16x16xf32>
    %128 = arith.mulf %125, %127 : vector<16x16xf32>
    %129 = arith.addf %123, %128 : vector<16x16xf32>
    %c0_84 = arith.constant 0 : index
    %c2_85 = arith.constant 2 : index
    %c0_86 = arith.constant 0 : index
    %c0_87 = arith.constant 0 : index
    %130 = vector.load %arg4[%c0_84, %c2_85, %c0_86, %c0_87] : memref<1x4x16x16xf32, #tpu.memory_space<vmem>>, vector<1x1x16x16xf32>
    %131 = vector.shape_cast %130 : vector<1x1x16x16xf32> to vector<16x16xf32>
    %c14 = arith.constant 14 : index
    %132 = memref.load %arg2[%c14] : memref<25xf32, #tpu.memory_space<smem>>
    %133 = vector.broadcast %132 : f32 to vector<16x16xf32>
    %134 = arith.mulf %131, %133 : vector<16x16xf32>
    %135 = arith.addf %129, %134 : vector<16x16xf32>
    %c0_88 = arith.constant 0 : index
    %c3_89 = arith.constant 3 : index
    %c0_90 = arith.constant 0 : index
    %c0_91 = arith.constant 0 : index
    %136 = vector.load %arg4[%c0_88, %c3_89, %c0_90, %c0_91] : memref<1x4x16x16xf32, #tpu.memory_space<vmem>>, vector<1x1x16x16xf32>
    %137 = vector.shape_cast %136 : vector<1x1x16x16xf32> to vector<16x16xf32>
    %c15 = arith.constant 15 : index
    %138 = memref.load %arg2[%c15] : memref<25xf32, #tpu.memory_space<smem>>
    %139 = vector.broadcast %138 : f32 to vector<16x16xf32>
    %140 = arith.mulf %137, %139 : vector<16x16xf32>
    %141 = arith.addf %135, %140 : vector<16x16xf32>
    %c0_92 = arith.constant 0 : index
    %c3_93 = arith.constant 3 : index
    %c0_94 = arith.constant 0 : index
    %c0_95 = arith.constant 0 : index
    %142 = vector.load %arg3[%c0_92, %c3_93, %c0_94, %c0_95] : memref<1x4x16x16xf32, #tpu.memory_space<vmem>>, vector<1x1x16x16xf32>
    %143 = vector.shape_cast %142 : vector<1x1x16x16xf32> to vector<16x16xf32>
    %144 = arith.mulf %143, %141 : vector<16x16xf32>
    %145 = arith.addf %115, %144 : vector<16x16xf32>
    %146 = arith.negf %145 : vector<16x16xf32>
    %147 = math.exp %146 : vector<16x16xf32>
    %cst = arith.constant 1.000000e+00 : f32
    %148 = vector.broadcast %cst : f32 to vector<16x16xf32>
    %149 = arith.addf %148, %147 : vector<16x16xf32>
    %150 = arith.divf %148, %149 : vector<16x16xf32>
    %c0_96 = arith.constant 0 : index
    %c0_97 = arith.constant 0 : index
    %c0_98 = arith.constant 0 : index
    %c0_99 = arith.constant 0 : index
    %151 = vector.load %arg3[%c0_96, %c0_97, %c0_98, %c0_99] : memref<1x4x16x16xf32, #tpu.memory_space<vmem>>, vector<1x1x16x16xf32>
    %152 = vector.shape_cast %151 : vector<1x1x16x16xf32> to vector<16x16xf32>
    %c0_100 = arith.constant 0 : index
    %c0_101 = arith.constant 0 : index
    %c0_102 = arith.constant 0 : index
    %c0_103 = arith.constant 0 : index
    %153 = vector.load %arg4[%c0_100, %c0_101, %c0_102, %c0_103] : memref<1x4x16x16xf32, #tpu.memory_space<vmem>>, vector<1x1x16x16xf32>
    %154 = vector.shape_cast %153 : vector<1x1x16x16xf32> to vector<16x16xf32>
    %155 = arith.subf %154, %152 : vector<16x16xf32>
    %156 = arith.mulf %150, %155 : vector<16x16xf32>
    %157 = arith.addf %152, %156 : vector<16x16xf32>
    %c0_104 = arith.constant 0 : index
    %c0_105 = arith.constant 0 : index
    %c0_106 = arith.constant 0 : index
    %c0_107 = arith.constant 0 : index
    %158 = vector.load %arg5[%c0_104, %c0_105, %c0_106, %c0_107] : memref<1x4x16x16xf32, #tpu.memory_space<vmem>>, vector<1x1x16x16xf32>
    %159 = vector.shape_cast %158 : vector<1x1x16x16xf32> to vector<16x16xf32>
    %160 = vector.shape_cast %157 : vector<16x16xf32> to vector<1x1x16x16xf32>
    tpu.vector_store %arg5[%c0_104, %c0_105, %c0_106, %c0_107], %160 {strides = array<i32>} : memref<1x4x16x16xf32, #tpu.memory_space<vmem>>, vector<1x1x16x16xf32>,
    %c0_108 = arith.constant 0 : index
    %c1_109 = arith.constant 1 : index
    %c0_110 = arith.constant 0 : index
    %c0_111 = arith.constant 0 : index
    %161 = vector.load %arg3[%c0_108, %c1_109, %c0_110, %c0_111] : memref<1x4x16x16xf32, #tpu.memory_space<vmem>>, vector<1x1x16x16xf32>
    %162 = vector.shape_cast %161 : vector<1x1x16x16xf32> to vector<16x16xf32>
    %c0_112 = arith.constant 0 : index
    %c1_113 = arith.constant 1 : index
    %c0_114 = arith.constant 0 : index
    %c0_115 = arith.constant 0 : index
    %163 = vector.load %arg4[%c0_112, %c1_113, %c0_114, %c0_115] : memref<1x4x16x16xf32, #tpu.memory_space<vmem>>, vector<1x1x16x16xf32>
    %164 = vector.shape_cast %163 : vector<1x1x16x16xf32> to vector<16x16xf32>
    %165 = arith.subf %164, %162 : vector<16x16xf32>
    %166 = arith.mulf %150, %165 : vector<16x16xf32>
    %167 = arith.addf %162, %166 : vector<16x16xf32>
    %c0_116 = arith.constant 0 : index
    %c1_117 = arith.constant 1 : index
    %c0_118 = arith.constant 0 : index
    %c0_119 = arith.constant 0 : index
    %168 = vector.load %arg5[%c0_116, %c1_117, %c0_118, %c0_119] : memref<1x4x16x16xf32, #tpu.memory_space<vmem>>, vector<1x1x16x16xf32>
    %169 = vector.shape_cast %168 : vector<1x1x16x16xf32> to vector<16x16xf32>
    %170 = vector.shape_cast %167 : vector<16x16xf32> to vector<1x1x16x16xf32>
    tpu.vector_store %arg5[%c0_116, %c1_117, %c0_118, %c0_119], %170 {strides = array<i32>} : memref<1x4x16x16xf32, #tpu.memory_space<vmem>>, vector<1x1x16x16xf32>,
    %c0_120 = arith.constant 0 : index
    %c2_121 = arith.constant 2 : index
    %c0_122 = arith.constant 0 : index
    %c0_123 = arith.constant 0 : index
    %171 = vector.load %arg3[%c0_120, %c2_121, %c0_122, %c0_123] : memref<1x4x16x16xf32, #tpu.memory_space<vmem>>, vector<1x1x16x16xf32>
    %172 = vector.shape_cast %171 : vector<1x1x16x16xf32> to vector<16x16xf32>
    %c0_124 = arith.constant 0 : index
    %c2_125 = arith.constant 2 : index
    %c0_126 = arith.constant 0 : index
    %c0_127 = arith.constant 0 : index
    %173 = vector.load %arg4[%c0_124, %c2_125, %c0_126, %c0_127] : memref<1x4x16x16xf32, #tpu.memory_space<vmem>>, vector<1x1x16x16xf32>
    %174 = vector.shape_cast %173 : vector<1x1x16x16xf32> to vector<16x16xf32>
    %175 = arith.subf %174, %172 : vector<16x16xf32>
    %176 = arith.mulf %150, %175 : vector<16x16xf32>
    %177 = arith.addf %172, %176 : vector<16x16xf32>
    %c0_128 = arith.constant 0 : index
    %c2_129 = arith.constant 2 : index
    %c0_130 = arith.constant 0 : index
    %c0_131 = arith.constant 0 : index
    %178 = vector.load %arg5[%c0_128, %c2_129, %c0_130, %c0_131] : memref<1x4x16x16xf32, #tpu.memory_space<vmem>>, vector<1x1x16x16xf32>
    %179 = vector.shape_cast %178 : vector<1x1x16x16xf32> to vector<16x16xf32>
    %180 = vector.shape_cast %177 : vector<16x16xf32> to vector<1x1x16x16xf32>
    tpu.vector_store %arg5[%c0_128, %c2_129, %c0_130, %c0_131], %180 {strides = array<i32>} : memref<1x4x16x16xf32, #tpu.memory_space<vmem>>, vector<1x1x16x16xf32>,
    %c0_132 = arith.constant 0 : index
    %c3_133 = arith.constant 3 : index
    %c0_134 = arith.constant 0 : index
    %c0_135 = arith.constant 0 : index
    %181 = vector.load %arg3[%c0_132, %c3_133, %c0_134, %c0_135] : memref<1x4x16x16xf32, #tpu.memory_space<vmem>>, vector<1x1x16x16xf32>
    %182 = vector.shape_cast %181 : vector<1x1x16x16xf32> to vector<16x16xf32>
    %c0_136 = arith.constant 0 : index
    %c3_137 = arith.constant 3 : index
    %c0_138 = arith.constant 0 : index
    %c0_139 = arith.constant 0 : index
    %183 = vector.load %arg4[%c0_136, %c3_137, %c0_138, %c0_139] : memref<1x4x16x16xf32, #tpu.memory_space<vmem>>, vector<1x1x16x16xf32>
    %184 = vector.shape_cast %183 : vector<1x1x16x16xf32> to vector<16x16xf32>
    %185 = arith.subf %184, %182 : vector<16x16xf32>
    %186 = arith.mulf %150, %185 : vector<16x16xf32>
    %187 = arith.addf %182, %186 : vector<16x16xf32>
    %c0_140 = arith.constant 0 : index
    %c3_141 = arith.constant 3 : index
    %c0_142 = arith.constant 0 : index
    %c0_143 = arith.constant 0 : index
    %188 = vector.load %arg5[%c0_140, %c3_141, %c0_142, %c0_143] : memref<1x4x16x16xf32, #tpu.memory_space<vmem>>, vector<1x1x16x16xf32>
    %189 = vector.shape_cast %188 : vector<1x1x16x16xf32> to vector<16x16xf32>
    %190 = vector.shape_cast %187 : vector<16x16xf32> to vector<1x1x16x16xf32>
    tpu.vector_store %arg5[%c0_140, %c3_141, %c0_142, %c0_143], %190 {strides = array<i32>} : memref<1x4x16x16xf32, #tpu.memory_space<vmem>>, vector<1x1x16x16xf32>,
    return
  }
  func.func @transform_0(%arg0: i32, %arg1: i32) -> i32 {
    %c0_i32 = arith.constant 0 : i32
    %c0_i32_0 = arith.constant 0 : i32
    return %c0_i32 : i32
  }
  func.func @transform_1(%arg0: i32, %arg1: i32) -> (i32, i32, i32, i32) {
    %c0_i32 = arith.constant 0 : i32
    %c0_i32_0 = arith.constant 0 : i32
    %c0_i32_1 = arith.constant 0 : i32
    return %arg0, %c0_i32, %arg1, %c0_i32_0 : i32, i32, i32, i32
  }
  func.func @transform_2(%arg0: i32, %arg1: i32) -> (i32, i32, i32, i32) {
    %c0_i32 = arith.constant 0 : i32
    %c0_i32_0 = arith.constant 0 : i32
    %c0_i32_1 = arith.constant 0 : i32
    return %arg0, %c0_i32, %arg1, %c0_i32_0 : i32, i32, i32, i32
  }
  func.func @transform_3(%arg0: i32, %arg1: i32) -> (i32, i32, i32, i32) {
    %c0_i32 = arith.constant 0 : i32
    %c0_i32_0 = arith.constant 0 : i32
    %c0_i32_1 = arith.constant 0 : i32
    return %arg0, %c0_i32, %arg1, %c0_i32_0 : i32, i32, i32, i32
  }
}

</mosaic_0001>

<bundles_post_ra>
// kernel: pag_forward.1
= control target key start
LH: loop header
LB: loop body
LE: loop exit
PB: predicated region body
PF: predicated region fallthrough
CT: control target
= control target key end

     0   :  { %8 = vsyncpa [#allocation4], 0  ;;  %s1195_s0 = inlined_call_operand.vmem [shape: f32[25], index: 0, kind: input, shape index: {}]   ;;  %s1196_s1 = inlined_call_operand.vmem [shape: f32[2,4,16,16], index: 1, kind: input, shape index: {}]   ;;  %s1197_s2 = inlined_call_operand.vmem [shape: f32[2,4,16,16], index: 2, kind: input, shape index: {}]   ;;  %s1198_s3 = inlined_call_operand.hbm [shape: f32[2,4,16,16], index: 3, kind: output, shape index: {}]  }
   0x1   :  { %9 = vsyncpa [#allocation3], 0 }
   0x2   :  { %11 = vsyncpa [#allocation3 + $0x1], 0  ;;  %s876_s12 = smov 0   ;;  %s878_s13 = smov 0  }
   0x3   :  { %s880_s14 = smov 0   ;;  %s882_s15 = smov 0  }
   0x4   :  { %s884_s16 = smov 0   ;;  %s886_s17 = smov 0  }
   0x5 LB: > { %s603_s18 = sadd.s32 4294967295, %s850_s17   ;;  %s604_s19 = sadd.s32 4294967294, %s850_s17   ;;  %s850_s17 = sphi %s886_s17, %s17_s17   ;;  %s846_s16 = sphi %s884_s16, %s1207_s16   ;;  %s842_s15 = sphi %s882_s15, %s1206_s15   ;;  %s838_s14 = sphi %s880_s14, %s1205_s14   ;;  %s834_s13 = sphi %s878_s13, %s1204_s13   ;;  %s830_s12 = sphi %s876_s12, %s1203_s12  }
   0x6   : > { %s29_s20 = sadd.s32 1, %s846_s16  ;;  %s115_s21 = sadd.s32 1, %s838_s14 }
   0x7   : > { %p31_p0 = scmp.ge.s32.totalorder %s29_s20, 2  ;;  %p125_p1 = scmp.ne.s32.totalorder %s838_s14, %s834_s13 }
   0x8   : > { %p126_p2 = scmp.eq.s32.totalorder %s603_s18, 1  ;;  %p131_p3 = scmp.ne.s32.totalorder %s834_s13, %s830_s12 }
   0x9   : > { %s1209_s20 = smov (%p31_p0, %s29_s20), 0  ;;  %p132_p5 = scmp.eq.s32.totalorder %s604_s19, 1 }
   0xa   : > { %p916_p4 = por %p126_p2, %p125_p1  ;;  %s110_s23 = ssub.s32 %s846_s16, %s1209_s20 }
   0xb   : > { %p605_p6 = scmp.ge.s32.totalorder %s850_s17, 1  ;;  %p113_p7 = scmp.eq.s32.totalorder %s110_s23, 0 }
   0xc   : > { %p923_p8 = por %p132_p5, %p131_p3  ;;  %p139_p9 = scmp.lt.s32.totalorder %s850_s17, 3 }
   0xd   : > { %s929_s25 = scalar_select %p113_p7, %s838_s14, %s115_s21  }
   0xe   : > { %p931_p10 = pnand %p605_p6, %p139_p9  ;;  %p935_p11 = scmp.eq.s32.totalorder %s603_s18, 0 }
   0xf   : > { %s152_s30 = sshll.u32 %s1195_s0, 4  ;;  %s153_s30 = int_to_ptr.vmem [resolvable:$true] %s152_s30 }
  0x10   : > { %p685_p12 = pneg %p931_p10  ;;  %s755_s4 = scalar_lea.vmem %s153_s30, 16 }
  0x11   : > { %p756_p0 = scmp.ne.s32.totalorder %s153_s30, %s755_s4  ;;  %p763_p5 = scmp.lt.s32.totalorder %s153_s30, %s153_s30 }
  0x12   : > { %p686_p13 = pnand %p935_p11, %p685_p12  ;;  %p764_p6 = scmp.lt.s32.totalorder %s755_s4, %s755_s4 }
  0x14   : > { %p757_p1 = pneg %p686_p13  ;;  %p765_p7 = por %p764_p6, %p763_p5 }
  0x16   : > { %p758_p2 = pnand %p757_p1, %p756_p0 }
  0x18   : > { %p759_p3 = pneg %p758_p2 }
  0x1a   : > { %p766_p9 = pnand %p765_p7, %p759_p3 }
  0x1c   : > { %769 = shalt.err (!%p766_p9)
}
  0x1d   : > { %s852_s5 = smov [#allocation2]   ;;  %191 = sbr.rel (%p931_p10) target bundleno = 136 (0x88), region = 32 }
  0x1e   : > { %688 = dma.vmem_to_smem (!%p686_p13), %s153_s30, 16, %s852_s5, [#allocation4]  }
  0x22   : > { %821 = dma.done.wait (%p935_p11), [#allocation4], 16  }
  0x23   : > { %823 = vsyncadd (%p935_p11), [#allocation4], 4294967280 }
  0x24   : > { %197 = sfence }
  0x25   : > { %p230_p12 = scmp.lt.s32.totalorder %s842_s15, 1  ;;  %s615_s6 = sld [smem:[#allocation2 + $0x14]]  ;;  %vm436_vm0 = vcmask 130048  }
  0x26   : > { %s616_s7 = sld [smem:[#allocation2 + $0x18]] }
  0x27   : > { %s954_s8 = scalar_select %p230_p12, %s842_s15, 1 }
  0x28   : > { %s619_s9 = sld [smem:[#allocation2 + $0x15]] }
  0x29   : > { %s676_s10 = sshll.u32 %s954_s8, 6  ;;  %s622_s11 = sld [smem:[#allocation2 + $0x16]] }
  0x2a   : > { %s247_s21 = scalar_lea.vmem %s1197_s2, %s676_s10  ;;  %s964_s23 = sld [smem:[#allocation2 + $0x17]] }
  0x2b   : > { %v962_v0 = vld [vmem:[%s247_s21] sm:$0xff]  ;;  %v253_v1 = vstv %s615_s6  ;;  %s967_s26 = sld [smem:[#allocation2]]  ;;  %v971_v4 = vld [vmem:[%s247_s21 + $0x8] sm:$0xff]  ;;  %v973_v6 = vld [vmem:[%s247_s21 + $0x10] sm:$0xff] }
  0x2c   : > { %v254_v2 = vmul.f32 %v253_v1, %v962_v0  ;;  %v257_v3 = vstv %s616_s7  ;;  %s969_s27 = sld [smem:[#allocation2 + $0x10]]  ;;  %v255_v8 = vmul.f32 %v253_v1, %v971_v4  ;;  %v978_v9 = vld [vmem:[%s247_s21 + $0x18] sm:$0xff]  ;;  %v981_v11 = vld [vmem:[%s247_s21 + $0x20] sm:$0xff]  ;;  %v986_v14 = vld [vmem:[%s247_s21 + $0x28] sm:$0xff] }
  0x2d   : > { %s975_s28 = sld [smem:[#allocation2 + $0x1]]  ;;  %v992_v19 = vld [vmem:[%s247_s21 + $0x30] sm:$0xff]  ;;  %v997_v21 = vld [vmem:[%s247_s21 + $0x38] sm:$0xff]  ;;  %s1025_s21 = scalar_lea.vmem %s1196_s1, %s676_s10 }
  0x2e   : > { %v258_v5 = vadd.f32 %v257_v3, %v254_v2  ;;  %v264_v7 = vstv %s619_s9  ;;  %s983_s29 = sld [smem:[#allocation2 + $0x2]]  ;;  %v259_v16 = vadd.f32 %v257_v3, %v255_v8  ;;  %v1043_v52 = vld [vmem:[%s1025_s21] sm:$0xff]  ;;  %v1064_v8 = vld [vmem:[%s1025_s21 + $0x8] sm:$0xff] }
  0x2f   : > { %v265_v10 = vmul.f32 %v973_v6, %v264_v7  ;;  %v273_v12 = vstv %s622_s11  ;;  %v266_v13 = vmul.f32 %v978_v9, %v264_v7  ;;  %s989_s30 = sld [smem:[#allocation2 + $0x3]] }
  0x30   : > { %v274_v15 = vmul.f32 %v981_v11, %v273_v12  ;;  %v275_v17 = vmul.f32 %v986_v14, %v273_v12  ;;  %v282_v20 = vstv %s964_s23  ;;  %s995_s4 = sld [smem:[#allocation2 + $0x4]] }
  0x31   : > { %v267_v18 = vadd.f32 %v265_v10, %v258_v5  ;;  %v283_v22 = vmul.f32 %v992_v19, %v282_v20  ;;  %v288_v23 = vstv %s967_s26  ;;  %s1001_s5 = sld [smem:[#allocation2 + $0x11]]  ;;  %v268_v24 = vadd.f32 %v266_v13, %v259_v16 }
  0x32   : > { %v284_v25 = vmul.f32 %v997_v21, %v282_v20  ;;  %v289_v27 = vmul.f32 %v288_v23, %v962_v0  ;;  %v292_v28 = vstv %s969_s27  ;;  %s1006_s6 = sld [smem:[#allocation2 + $0x5]]  ;;  %v290_v29 = vmul.f32 %v288_v23, %v971_v4 }
  0x33   : > { %v276_v26 = vadd.f32 %v274_v15, %v267_v18  ;;  %v296_v30 = vstv %s975_s28  ;;  %s1010_s7 = sld [smem:[#allocation2 + $0x6]]  ;;  %v277_v31 = vadd.f32 %v275_v17, %v268_v24  ;;  %v1071_v17 = vld [vmem:[%s1025_s21 + $0x10] sm:$0xff] }
  0x34   : > { %v293_v33 = vadd.f32 %v292_v28, %v289_v27  ;;  %v297_v34 = vmul.f32 %v973_v6, %v296_v30  ;;  %v302_v35 = vstv %s983_s29  ;;  %s1014_s9 = sld [smem:[#allocation2 + $0x7]]  ;;  %v294_v39 = vadd.f32 %v292_v28, %v290_v29 }
  0x35   : > { %v285_v32 = vadd.f32 %v283_v22, %v276_v26  ;;  %v303_v36 = vmul.f32 %v981_v11, %v302_v35  ;;  %v308_v37 = vstv %s989_s30  ;;  %s1018_s11 = sld [smem:[#allocation2 + $0x8]]  ;;  %v286_v38 = vadd.f32 %v284_v25, %v277_v31 }
  0x36   : > { %v299_v40 = vadd.f32 %v297_v34, %v293_v33  ;;  %v309_v41 = vmul.f32 %v992_v19, %v308_v37  ;;  %v320_v42 = vstv %s995_s4  ;;  %s1029_s23 = sld [smem:[#allocation2 + $0x12]]  ;;  %v298_v43 = vmul.f32 %v978_v9, %v296_v30 }
  0x37   : > { %v321_v44 = vmul.f32 %v320_v42, %v962_v0  ;;  %v324_v45 = vstv %s1001_s5  ;;  %s1034_s26 = sld [smem:[#allocation2 + $0x9]]  ;;  %v304_v46 = vmul.f32 %v986_v14, %v302_v35  ;;  %v310_v47 = vmul.f32 %v997_v21, %v308_v37  ;;  %s226_s5 = sand.u32 1, %s834_s13  }
  0x38   : > { %v305_v48 = vadd.f32 %v303_v36, %v299_v40  ;;  %v328_v49 = vstv %s1006_s6  ;;  %s1039_s8 = sld [smem:[#allocation2 + $0xa]]  ;;  %v300_v50 = vadd.f32 %v298_v43, %v294_v39  ;;  %v322_v51 = vmul.f32 %v320_v42, %v971_v4  ;;  %s610_s6 = sshll.u32 %s226_s5, 6 }
  0x39   : > { %v325_v53 = vadd.f32 %v324_v45, %v321_v44  ;;  %v329_v54 = vmul.f32 %v973_v6, %v328_v49  ;;  %v334_v55 = vstv %s1010_s7  ;;  %s1047_s10 = sld [smem:[#allocation2 + $0xb]]  ;;  %v330_v56 = vmul.f32 %v978_v9, %v328_v49  ;;  %s228_s7 = scalar_lea.vmem [#allocation5], %s610_s6 }
  0x3a   : > { %v311_v57 = vadd.f32 %v309_v41, %v305_v48  ;;  %v335_v58 = vmul.f32 %v981_v11, %v334_v55  ;;  %v340_v59 = vstv %s1014_s9  ;;  %s1052_s27 = sld [smem:[#allocation2 + $0xc]]  ;;  %v306_v60 = vadd.f32 %v304_v46, %v300_v50  ;;  %v1089_v41 = vld [vmem:[%s1025_s21 + $0x20] sm:$0xff]  ;;  %s494_s9 = sshll.u32 %s228_s7, 4  ;;  %s1135_s9 = int_to_ptr.vmem [resolvable:$true] %s494_s9 }
  0x3b   : > { %v331_v61 = vadd.f32 %v329_v54, %v325_v53  ;;  %v341_v62 = vmul.f32 %v992_v19, %v340_v59  ;;  %v353_v63 = vstv %s1018_s11  ;;  %s1056_s28 = sld [smem:[#allocation2 + $0x13]]  ;;  %v326_v1 = vadd.f32 %v324_v45, %v322_v51  ;;  %v1094_v45 = vld [vmem:[%s1025_s21 + $0x18] sm:$0xff]  ;;  %s678_s11 = sshll.u32 %s842_s15, 10 }
  0x3c   : > { %v315_v2 = vmul.f32 %v1043_v52, %v311_v57  ;;  %v354_v3 = vmul.f32 %v353_v63, %v962_v0  ;;  %v357_v5 = vstv %s1029_s23  ;;  %s1061_s29 = sld [smem:[#allocation2 + $0xd]]  ;;  %v312_v7 = vadd.f32 %v310_v47, %v306_v60  ;;  %s1150_s15 = scalar_lea.sflag [#allocation3], %s226_s5 }
  0x3d   : > { %v337_v10 = vadd.f32 %v335_v58, %v331_v61  ;;  %v361_v12 = vstv %s1034_s26  ;;  %s1067_s30 = sld [smem:[#allocation2 + $0xe]]  ;;  %v332_v13 = vadd.f32 %v330_v56, %v326_v1  ;;  %v336_v15 = vmul.f32 %v986_v14, %v334_v55  ;;  %s770_s23 = scalar_lea.vmem %s1135_s9, 1024 }
  0x3e   : > { %v317_v16 = vadd.f32 %v315_v2, %v285_v32  ;;  %v358_v18 = vadd.f32 %v357_v5, %v354_v3  ;;  %v362_v20 = vmul.f32 %v973_v6, %v361_v12  ;;  %v367_v22 = vstv %s1039_s8  ;;  %s1075_s4 = sld [smem:[#allocation2 + $0xf]]  ;;  %p771_p10 = scmp.ne.s32.totalorder %s1135_s9, %s770_s23 }
  0x3f   : > { %v343_v23 = vadd.f32 %v341_v62, %v337_v10  ;;  %v368_v24 = vmul.f32 %v981_v11, %v367_v22  ;;  %v373_v25 = vstv %s1047_s10  ;;  %v316_v26 = vmul.f32 %v1064_v8, %v312_v7  ;;  %v643_v10 = vld [vmem:[%s1025_s21 + $0x28] sm:$0xff]  ;;  %s853_s26 = smov [#allocation5]  }
  0x40   : > { %v364_v27 = vadd.f32 %v362_v20, %v358_v18  ;;  %v374_v28 = vmul.f32 %v992_v19, %v373_v25  ;;  %v386_v29 = vstv %s1052_s27  ;;  %v338_v30 = vadd.f32 %v336_v15, %v332_v13  ;;  %p772_p11 = pnand %p771_p10, %p916_p4  ;;  %s774_s8 = sshll.u32 %s853_s26, 4  ;;  %s775_s8 = int_to_ptr.vmem [resolvable:$false] %s774_s8 }
  0x41   : > { %v348_v31 = vmul.f32 %v1071_v17, %v343_v23  ;;  %v387_v32 = vmul.f32 %v386_v29, %v962_v0  ;;  %v390_v33 = vstv %s1056_s28  ;;  %v318_v34 = vadd.f32 %v316_v26, %v286_v38  ;;  %v650_v23 = vld [vmem:[%s1025_s21 + $0x38] sm:$0xff]  ;;  %s776_s10 = scalar_lea.vmem %s775_s8, 2048  ;;  %p777_p0 = scmp.lt.s32.totalorder %s1135_s9, %s775_s8 }
  0x42   : > { %v370_v35 = vadd.f32 %v368_v24, %v364_v27  ;;  %v394_v36 = vstv %s1061_s29  ;;  %v342_v37 = vmul.f32 %v997_v21, %v340_v59  ;;  %v355_v39 = vmul.f32 %v353_v63, %v971_v4  ;;  %v649_v63 = vld [vmem:[%s1025_s21 + $0x30] sm:$0xff]  ;;  %s1140_s21 = scalar_lea.hbm %s1198_s3, %s678_s11  ;;  %p773_p13 = pneg %p772_p11 }
  0x43   : > { %v350_v40 = vadd.f32 %v348_v31, %v317_v16  ;;  %v391_v42 = vadd.f32 %v390_v33, %v387_v32  ;;  %v395_v43 = vmul.f32 %v973_v6, %v394_v36  ;;  %v400_v44 = vstv %s1067_s30  ;;  %p778_p1 = scmp.lt.s32.totalorder %s776_s10, %s770_s23 }
  0x44   : > { %v376_v46 = vadd.f32 %v374_v28, %v370_v35  ;;  %v401_v47 = vmul.f32 %v981_v11, %v400_v44  ;;  %v406_v38 = vstv %s1075_s4  ;;  %v344_v48 = vadd.f32 %v342_v37, %v338_v30 }
  0x45   : > { %v397_v49 = vadd.f32 %v395_v43, %v391_v42  ;;  %v407_v50 = vmul.f32 %v992_v19, %v406_v38  ;;  %v359_v51 = vadd.f32 %v357_v5, %v355_v39  ;;  %v363_v53 = vmul.f32 %v978_v9, %v361_v12  ;;  %p779_p2 = por %p778_p1, %p777_p0 }
  0x46   : > { %v381_v54 = vmul.f32 %v1089_v41, %v376_v46  ;;  %v349_v55 = vmul.f32 %v1094_v45, %v344_v48  ;;  %v369_v56 = vmul.f32 %v986_v14, %v367_v22  ;;  %v375_v57 = vmul.f32 %v997_v21, %v373_v25 }
  0x47   : > { %v403_v58 = vadd.f32 %v401_v47, %v397_v49  ;;  %v365_v59 = vadd.f32 %v363_v53, %v359_v51  ;;  %v388_v60 = vmul.f32 %v386_v29, %v971_v4  ;;  %v396_v61 = vmul.f32 %v978_v9, %v394_v36  ;;  %p780_p3 = pnand %p779_p2, %p773_p13 }
  0x48   : > { %v383_v62 = vadd.f32 %v381_v54, %v350_v40  ;;  %v402_v5 = vmul.f32 %v986_v14, %v400_v44  ;;  %v351_v7 = vadd.f32 %v349_v55, %v318_v34  ;;  %v408_v16 = vmul.f32 %v997_v21, %v406_v38 }
  0x49   : > { %v409_v1 = vadd.f32 %v407_v50, %v403_v58  ;;  %v371_v2 = vadd.f32 %v369_v56, %v365_v59  ;;  %v392_v3 = vadd.f32 %v390_v33, %v388_v60  ;;  %v430_v34 = vsub.f32 %v962_v0, %v1043_v52 }
  0x4a   : > { %v443_v35 = vsub.f32 %v973_v6, %v1071_v17  ;;  %v456_v36 = vsub.f32 %v981_v11, %v1089_v41  ;;  %v469_v37 = vsub.f32 %v992_v19, %v649_v63  ;;  %v431_v0 = vsub.f32 %v971_v4, %v1064_v8 }
  0x4b   : > { %v414_v12 = vmul.f32 %v649_v63, %v409_v1  ;;  %v377_v13 = vadd.f32 %v375_v57, %v371_v2  ;;  %v398_v15 = vadd.f32 %v396_v61, %v392_v3  ;;  %v444_v6 = vsub.f32 %v978_v9, %v1094_v45 }
  0x4c   : > { %v457_v46 = vsub.f32 %v986_v14, %v643_v10  ;;  %v470_v11 = vsub.f32 %v997_v21, %v650_v23 }
  0x4d   : > { %v416_v18 = vadd.f32 %v414_v12, %v383_v62  ;;  %v382_v20 = vmul.f32 %v643_v10, %v377_v13  ;;  %v404_v22 = vadd.f32 %v402_v5, %v398_v15 }
  0x4f   : > { %v651_v24 = vmul.f32 -1.442695, %v416_v18  ;;  %v384_v25 = vadd.f32 %v382_v20, %v351_v7  ;;  %v410_v26 = vadd.f32 %v408_v16, %v404_v22 }
  0x51   : > { %747 = vpow2.f32 %v651_v24  ;;  %v415_v27 = vmul.f32 %v650_v23, %v410_v26 }
  0x53   : > { %v417_v28 = vadd.f32 %v415_v27, %v384_v25 }
  0x55   : > { %v652_v29 = vmul.f32 -1.442695, %v417_v28 }
  0x57   : > { %749 = vpow2.f32 %v652_v29 }
  0x5e   : > { %v748_v30 = vpop.eup %747 }
  0x5f   : > { %v424_v31 = vadd.f32 1.0, %v748_v30 }
  0x61   : > { %751 = vrcp.f32 %v424_v31 }
  0x64   : > { %v750_v32 = vpop.eup %749 }
  0x65   : > { %v425_v33 = vadd.f32 1.0, %v750_v32 }
  0x67   : > { %753 = vrcp.f32 %v425_v33 }
  0x6e   : > { %v752_v39 = vpop.eup %751 }
  0x6f   : > { %v432_v40 = vmul.f32 %v752_v39, %v430_v34  ;;  %v445_v42 = vmul.f32 %v752_v39, %v443_v35  ;;  %v458_v43 = vmul.f32 %v752_v39, %v456_v36  ;;  %v471_v44 = vmul.f32 %v752_v39, %v469_v37 }
  0x71   : > { %v434_v19 = vadd.f32 %v432_v40, %v1043_v52  ;;  %v447_v47 = vadd.f32 %v1071_v17, %v445_v42  ;;  %v460_v38 = vadd.f32 %v1089_v41, %v458_v43  ;;  %v473_v48 = vadd.f32 %v649_v63, %v471_v44 }
  0x73   : > { %437 = vst.msk [vmem:[%s228_s7] sm:$0xff] %vm436_vm0, %v434_v19  ;;  %657 = vst.msk [vmem:[%s228_s7 + $0x10] sm:$0xff] %vm436_vm0, %v447_v47 }
  0x74   : > { %663 = vst.msk [vmem:[%s228_s7 + $0x20] sm:$0xff] %vm436_vm0, %v460_v38  ;;  %669 = vst.msk [vmem:[%s228_s7 + $0x30] sm:$0xff] %vm436_vm0, %v473_v48  ;;  %v754_v4 = vpop.eup %753 }
  0x75   : > { %v433_v9 = vmul.f32 %v754_v4, %v431_v0  ;;  %v446_v14 = vmul.f32 %v754_v4, %v444_v6  ;;  %v459_v21 = vmul.f32 %v754_v4, %v457_v46  ;;  %v472_v52 = vmul.f32 %v754_v4, %v470_v11 }
  0x77   : > { %v435_v17 = vadd.f32 %v433_v9, %v1064_v8  ;;  %v448_v41 = vadd.f32 %v1094_v45, %v446_v14  ;;  %v461_v49 = vadd.f32 %v643_v10, %v459_v21  ;;  %v474_v50 = vadd.f32 %v650_v23, %v472_v52 }
  0x79   : > { %438 = vst.msk [vmem:[%s228_s7 + $0x8] sm:$0xff] %vm436_vm0, %v435_v17  ;;  %658 = vst.msk [vmem:[%s228_s7 + $0x18] sm:$0xff] %vm436_vm0, %v448_v41 }
  0x7a   : > { %664 = vst.msk [vmem:[%s228_s7 + $0x28] sm:$0xff] %vm436_vm0, %v461_v49  ;;  %670 = vst.msk [vmem:[%s228_s7 + $0x38] sm:$0xff] %vm436_vm0, %v474_v50 }
  0x7b   : > { %783 = shalt.err (!%p780_p3)
}
  0x7c   : > { %s784_s27 = scalar_lea.hbm %s1140_s21, 1024  ;;  %s788_s30 = scalar_lea.hbm %s1198_s3, 2048 }
  0x7d   : > { %p785_p5 = scmp.ne.s32.totalorder %s1140_s21, %s784_s27  ;;  %p789_p9 = scmp.lt.s32.totalorder %s1140_s21, %s1198_s3 }
  0x7e   : > { %p790_p12 = scmp.lt.s32.totalorder %s788_s30, %s784_s27 }
  0x7f   : > { %p786_p6 = pnand %p785_p5, %p916_p4 }
  0x80   : > { %p791_p10 = por %p790_p12, %p789_p9 }
  0x81   : > { %p787_p7 = pneg %p786_p6 }
  0x83   : > { %p792_p11 = pnand %p791_p10, %p787_p7 }
  0x85   : > { %795 = shalt.err (!%p792_p11)
}
  0x86   : > { %s854_s6 = smov 128   ;;  %s855_s7 = smov 8  }
  0x87   : > { %683 = dma.vmem_to_hbm [thread:$0]  (%p916_p4), %s1135_s9, 1024, %s1140_s21, %s1150_s15, %s854_s6, %s854_s6, %s855_s7  }
  0x88 PF: > { %p695_p13 = scmp.ge.s32.totalorder %s850_s17, 2  ;;  %s509_s11 = sand.u32 1, %s830_s12  }
  0x89   : > { %s510_s18 = scalar_lea.sflag [#allocation3], %s509_s11 }
  0x8a   : > { %p690_p0 = pnand %p695_p13, %p923_p8 }
  0x8c   : > { %p691_p1 = pneg %p690_p0 }
  0x8e   : > { %825 = dma.done.wait (%p691_p1), %s510_s18, 1024  }
  0x8f   : > { %827 = vsyncadd (%p691_p1), %s510_s18, 4294966272  ;;  %s17_s17 = sadd.s32 1, %s850_s17   ;;  %s1203_s12 = smov %s834_s13 }
  0x90   : > { %p14_p2 = scmp.ge.s32.totalorder %s17_s17, 4   ;;  %s1204_s13 = smov %s838_s14 }
  0x91   : > { %s1205_s14 = smov %s929_s25  ;;  %s1206_s15 = smov %s846_s16 }
  0x92   : > { %s1207_s16 = smov %s1209_s20  ;;  %16 = sbr.rel (!%p14_p2) target bundleno = 5 (0x5), region = 84 }
  0x97   :  { %515 = vsyncpa [#allocation3], 1 }
  0x98   :  { %517 = vsyncpa [#allocation3 + $0x1], 1 }
  0x99   :  { %518 = vsyncpa [#allocation4], 1 }
  0x9a   :  { %520 = vsyncpa [#allocation4 + $0x1], 1 }

</bundles_post_ra>
